<compile_context>
chip_gen: v5e
topology: v5e:2x2
jax: 0.10.0
libtpu: 0.0.40
codegen_flags: <defaults>
</compile_context>

<pallas_src>
import functools

import jax
import jax.numpy as jnp
from jax import lax
from jax.experimental import pallas as pl
from jax.experimental.pallas import tpu as pltpu


_LANE = 128
_ROW_BLOCK_MIN_M = 512                  # split M rows only when compute-bound (v7x 2-TC win)
_DEFAULT_VMEM_CAP = 64 * 1024 * 1024    # conservative fallback = v7x per-core VMEM


def _round_up(x, m):
    return ((x + m - 1) // m) * m


def _compute_dtype(dt, use_bf16_features):
    # bf16 feature maps stay bf16 (MXU accumulates in f32).  f32 inputs stay f32
    # unless the caller opts into bf16 compute.
    if dt == jnp.bfloat16:
        return jnp.bfloat16
    return jnp.bfloat16 if use_bf16_features else jnp.float32


def _vmem_capacity_bytes():
    try:
        cap = int(getattr(pltpu.get_tpu_info(), "vmem_capacity_bytes", 0))
        if cap > 0:
            return cap
    except Exception:
        pass
    return _DEFAULT_VMEM_CAP


def _choose_tk(k128, itemsize, stream_rows, fixed_resident_bytes, vmem_budget):
    """Largest 128-multiple divisor of k128 whose buffers fit the VMEM budget.

    `fixed_resident_bytes` covers resident f32 blocks (double-buffered output /
    accumulator / target scratch); streamed feature tiles take
    2 * stream_rows * tk * itemsize (double buffering).
    """
    avail = max(vmem_budget - fixed_resident_bytes, 2 * stream_rows * _LANE * itemsize)
    tk_budget = max(_LANE, avail // (2 * stream_rows * itemsize))
    # Keep tk large (>=512 where possible: amortizes the per-step accumulator RMW
    # that would otherwise saturate v5e's single vector-store slot), but cap it
    # so large K still gets a few grid steps of DMA/compute overlap.
    tk_cap = min(tk_budget, max(512, k128 // 4))
    units = k128 // _LANE
    best = _LANE
    for d in range(1, units + 1):
        if units % d == 0 and d * _LANE <= tk_cap:
            best = d * _LANE
    return int(best)


def _prep_feats(x, use_bf16_features):
    """NCHW -> (M, K) in compute dtype; K zero-padded only to the next lane multiple."""
    n, c, h, w = x.shape
    m, k = n * c, h * w
    dt = _compute_dtype(x.dtype, use_bf16_features)
    feats = x.reshape(m, k).astype(dt)
    k128 = _round_up(k, _LANE)
    if k128 != k:
        # Only the ragged lane tail is padded (zeros contribute exactly 0 to the
        # gram); K is NOT padded to a tile multiple, so no extra HBM round trip.
        feats = jnp.pad(feats, ((0, 0), (0, k128 - k)))
    return feats, m, k128


def _row_block(m, force_row_block):
    """Pick an M row-block size.  Returns (tm, n_blocks)."""
    if force_row_block or m >= _ROW_BLOCK_MIN_M:
        for tm in (512, 256, 128):
            if m % tm == 0 and m // tm >= 2:
                return tm, m // tm
    return m, 1


# ----------------------------------------------------------------------------
# Gram matrix kernel
# ----------------------------------------------------------------------------

def _gram_kernel(*refs, inv_norm):
    # refs = (lhs, g) on the single-row-block path (rhs aliases lhs), or
    #        (lhs, rhs, g) when M is split into row blocks.
    if len(refs) == 3:
        lhs_ref, rhs_ref, g_ref = refs
    else:
        lhs_ref, g_ref = refs
        rhs_ref = lhs_ref
    kk = pl.program_id(1)

    @pl.when(kk == 0)
    def _():
        g_ref[...] = jnp.zeros_like(g_ref)

    # Transpose-free F @ F.T: contract dim 1 of both operands on the MXU (no
    # per-tile vxpose), accumulating straight into the resident f32 output block.
    g_ref[...] += lax.dot_general(
        lhs_ref[...], rhs_ref[...],
        dimension_numbers=(((1,), (1,)), ((), ())),
        preferred_element_type=jnp.float32)

    @pl.when(kk == pl.num_programs(1) - 1)
    def _():
        g_ref[...] *= inv_norm


def gram_matrix_pallas(x, use_bf16_features=False, force_row_block=False):
    """Gram matrix of an NCHW feature map (PyTorch `gram_matrix` equivalent)."""
    n, c, h, w = x.shape
    feats, m, k128 = _prep_feats(x, use_bf16_features)
    itemsize = feats.dtype.itemsize
    inv_norm = 1.0 / float(n * c * h * w)
    tm, n_mblk = _row_block(m, force_row_block)

    vmem_cap = _vmem_capacity_bytes()
    stream_rows = tm + (m if n_mblk > 1 else 0)
    fixed_resident = 2 * tm * m * 4          # double-buffered f32 output block
    tk = _choose_tk(k128, itemsize, stream_rows, fixed_resident, vmem_cap // 2)
    n_k = k128 // tk

    in_specs = [pl.BlockSpec((tm, tk), lambda i, kk: (i, kk))]
    operands = [feats]
    if n_mblk > 1:
        # Second stream: full rows of F, re-read once per row block (only used in
        # the compute-bound regime where the extra reads hide behind the MXU).
        in_specs.append(pl.BlockSpec((m, tk), lambda i, kk: (0, kk)))
        operands.append(feats)

    return pl.pallas_call(
        functools.partial(_gram_kernel, inv_norm=inv_norm),
        out_shape=jax.ShapeDtypeStruct((m, m), jnp.float32),
        grid_spec=pltpu.PrefetchScalarGridSpec(
            num_scalar_prefetch=0,
            grid=(n_mblk, n_k),
            in_specs=in_specs,
            out_specs=pl.BlockSpec((tm, m), lambda i, kk: (i, 0)),
        ),
        compiler_params=pltpu.CompilerParams(
            dimension_semantics=("parallel", "arbitrary"),
            vmem_limit_bytes=int(vmem_cap * 3 // 4),
        ),
    )(*operands)


# ----------------------------------------------------------------------------
# Fused gram + MSE-vs-target kernel
# ----------------------------------------------------------------------------

def _style_loss_kernel(*refs, inv_norm, tm):
    # refs = (lhs[, rhs], tgt_hbm, loss, acc, tgt_vmem, sem)
    if len(refs) == 7:
        lhs_ref, rhs_ref, tgt_hbm, loss_ref, acc_ref, tgt_vmem, sem = refs
    else:
        lhs_ref, tgt_hbm, loss_ref, acc_ref, tgt_vmem, sem = refs
        rhs_ref = lhs_ref
    i = pl.program_id(0)
    kk = pl.program_id(1)

    row0 = pl.multiple_of(i * tm, tm)
    tgt_copy = pltpu.make_async_copy(tgt_hbm.at[pl.ds(row0, tm), :], tgt_vmem, sem)

    @pl.when(kk == 0)
    def _():
        acc_ref[...] = jnp.zeros_like(acc_ref)
        # The target rows are only needed at the final K step; start the DMA now
        # so it overlaps all the K-step compute instead of the prologue feature
        # DMAs, and only a single (tm, M) VMEM buffer is ever resident for it.
        tgt_copy.start()

    acc_ref[...] += lax.dot_general(
        lhs_ref[...], rhs_ref[...],
        dimension_numbers=(((1,), (1,)), ((), ())),
        preferred_element_type=jnp.float32)

    @pl.when(kk == pl.num_programs(1) - 1)
    def _():
        tgt_copy.wait()
        # Normalization + MSE partial sum happen once, at finalize.
        diff = acc_ref[...] * inv_norm - tgt_vmem[...]
        loss_ref[0, 0] = jnp.sum(diff * diff)


def style_loss_forward(x, target_gram, use_bf16_features=False, force_row_block=False):
    """Fused gram + MSE-vs-target. Returns (input unchanged, scalar loss)."""
    n, c, h, w = x.shape
    feats, m, k128 = _prep_feats(x, use_bf16_features)
    itemsize = feats.dtype.itemsize
    inv_norm = 1.0 / float(n * c * h * w)
    tm, n_mblk = _row_block(m, force_row_block)

    tgt = jnp.asarray(target_gram, dtype=jnp.float32)
    if tgt.shape != (m, m):
        raise ValueError(f"target gram shape {tgt.shape} != {(m, m)}")

    vmem_cap = _vmem_capacity_bytes()
    stream_rows = tm + (m if n_mblk > 1 else 0)
    fixed_resident = 2 * tm * m * 4          # f32 accumulator + target scratch (single-buffered)
    tk = _choose_tk(k128, itemsize, stream_rows, fixed_resident, vmem_cap // 2)
    n_k = k128 // tk

    in_specs = [pl.BlockSpec((tm, tk), lambda i, kk: (i, kk))]
    operands = [feats]
    if n_mblk > 1:
        in_specs.append(pl.BlockSpec((m, tk), lambda i, kk: (0, kk)))
        operands.append(feats)
    # Target gram stays in HBM; it is DMA'd manually inside the kernel.
    in_specs.append(pl.BlockSpec(memory_space=pl.ANY))
    operands.append(tgt)

    partial = pl.pallas_call(
        functools.partial(_style_loss_kernel, inv_norm=inv_norm, tm=tm),
        out_shape=jax.ShapeDtypeStruct((n_mblk, 1), jnp.float32),
        grid_spec=pltpu.PrefetchScalarGridSpec(
            num_scalar_prefetch=0,
            grid=(n_mblk, n_k),
            in_specs=in_specs,
            out_specs=pl.BlockSpec((1, 1), lambda i, kk: (i, 0),
                                   memory_space=pltpu.MemorySpace.SMEM),
            scratch_shapes=[
                pltpu.VMEM((tm, m), jnp.float32),    # gram accumulator (row block)
                pltpu.VMEM((tm, m), jnp.float32),    # target rows (manual DMA dst)
                pltpu.SemaphoreType.DMA(()),
            ],
        ),
        compiler_params=pltpu.CompilerParams(
            dimension_semantics=("parallel", "arbitrary"),
            vmem_limit_bytes=int(vmem_cap * 3 // 4),
        ),
    )(*operands)

    loss = jnp.sum(partial) / float(m * m)   # mean over the real M x M entries
    # Forward returns the input unchanged (StyleLoss is a pass-through layer).
    return x, loss


class StyleLoss:
    """JAX/Pallas equivalent of the PyTorch StyleLoss module."""

    def __init__(self, target_feature, use_bf16_features=False):
        self._use_bf16 = use_bf16_features
        # Target gram (detached constant), computed with the same Pallas kernel.
        self.target = gram_matrix_pallas(target_feature, use_bf16_features)
        self.loss = None

    def __call__(self, x, force_row_block=False):
        out, self.loss = style_loss_forward(
            x, self.target, self._use_bf16, force_row_block)
        return out


# ----------------------------------------------------------------------------
# Reference + self-test
# ----------------------------------------------------------------------------

def _gram_ref(x):
    n, c, h, w = x.shape
    f = x.reshape(n * c, h * w).astype(jnp.float32)
    return (f @ f.T) / float(n * c * h * w)


def _close(a, b, rtol=1e-2, atol=1e-4):
    return bool(jnp.allclose(jnp.asarray(a), jnp.asarray(b), rtol=rtol, atol=atol))


if __name__ == "__main__":
    key = jax.random.PRNGKey(0)
    k_tgt, k_in, k_tgt2, k_in2, k_in3 = jax.random.split(key, 5)

    # --- Test 1: PyTorch-spec small shapes (default single-row-block path). ---
    N, C, H, W = 2, 4, 16, 16
    target_feature = jax.random.normal(k_tgt, (N, C, H, W), dtype=jnp.float32)
    x = jax.random.normal(k_in, (N, C, H, W), dtype=jnp.float32)

    module = StyleLoss(target_feature)
    out = module(x)
    jax.block_until_ready(out)
    jax.block_until_ready(module.loss)

    g_ref = _gram_ref(x)
    t_ref = _gram_ref(target_feature)
    loss_ref = jnp.mean((g_ref - t_ref) ** 2)

    assert out.shape == x.shape and bool(jnp.allclose(out, x)), "output must pass input through"
    assert _close(module.target, t_ref), "target gram mismatch"
    assert _close(gram_matrix_pallas(x), g_ref), "gram mismatch"
    assert _close(module.loss, loss_ref, rtol=5e-2, atol=0.0), (module.loss, loss_ref)

    # --- Test 2: exercise the row-blocked (parallel-M / v7x) path. ---
    N2, C2, H2, W2 = 1, 256, 16, 16
    tf2 = jax.random.normal(k_tgt2, (N2, C2, H2, W2), dtype=jnp.float32)
    x2 = jax.random.normal(k_in2, (N2, C2, H2, W2), dtype=jnp.float32)
    mod2 = StyleLoss(tf2)
    out2 = mod2(x2, force_row_block=True)
    jax.block_until_ready(out2)
    jax.block_until_ready(mod2.loss)
    g2_ref = _gram_ref(x2)
    l2_ref = jnp.mean((g2_ref - _gram_ref(tf2)) ** 2)
    assert bool(jnp.allclose(out2, x2)), "row-blocked output must pass input through"
    assert _close(gram_matrix_pallas(x2, force_row_block=True), g2_ref), "row-blocked gram mismatch"
    assert _close(mod2.loss, l2_ref, rtol=5e-2, atol=0.0), (mod2.loss, l2_ref)

    # --- Test 3: K not a multiple of 128 (ragged lane-tail padding path). ---
    x3 = jax.random.normal(k_in3, (1, 8, 10, 10), dtype=jnp.float32)
    assert _close(gram_matrix_pallas(x3), _gram_ref(x3)), "ragged-K gram mismatch"

    print("KERNEL_OK")
</pallas_src>

<mosaic_0001>
module attributes {stable_mosaic.version = 11 : i64} {
  func.func @_gram_kernel(%arg0: i32, %arg1: i32, %arg2: memref<8x256xf32, #tpu.memory_space<vmem>>, %arg3: memref<8x8xf32, #tpu.memory_space<vmem>>) attributes {dimension_semantics = [#tpu.dimension_semantics<parallel>, #tpu.dimension_semantics<arbitrary>], iteration_bounds = array<i64: 1, 1>, scalar_prefetch = 0 : i64, scratch_operands = 0 : i64, tpu.core_type = #tpu.core_type<tc>, window_params = [{transform_indices = @transform_0, window_bounds = array<i64: 8, 256>}, {transform_indices = @transform_1, window_bounds = array<i64: 8, 8>}]} {
    %c0_i32 = arith.constant 0 : i32
    %0 = arith.cmpi eq, %arg1, %c0_i32 : i32
    %1 = arith.extui %0 : i1 to i32
    %c0_i32_0 = arith.constant 0 : i32
    %2 = arith.cmpi ne, %1, %c0_i32_0 : i32
    scf.if %2 {
      %cst_10 = arith.constant 0.000000e+00 : f32
      %12 = vector.broadcast %cst_10 : f32 to vector<8x8xf32>
      %c0_11 = arith.constant 0 : index
      %c0_12 = arith.constant 0 : index
      %13 = vector.load %arg3[%c0_11, %c0_12] : memref<8x8xf32, #tpu.memory_space<vmem>>, vector<8x8xf32>
      tpu.vector_store %arg3[%c0_11, %c0_12], %12 {strides = array<i32>} : memref<8x8xf32, #tpu.memory_space<vmem>>, vector<8x8xf32>,
    } else {
    }
    %c0 = arith.constant 0 : index
    %c0_1 = arith.constant 0 : index
    %3 = vector.load %arg3[%c0, %c0_1] : memref<8x8xf32, #tpu.memory_space<vmem>>, vector<8x8xf32>
    %c0_2 = arith.constant 0 : index
    %c0_3 = arith.constant 0 : index
    %4 = vector.load %arg2[%c0_2, %c0_3] : memref<8x256xf32, #tpu.memory_space<vmem>>, vector<8x256xf32>
    %c0_4 = arith.constant 0 : index
    %c0_5 = arith.constant 0 : index
    %5 = vector.load %arg2[%c0_4, %c0_5] : memref<8x256xf32, #tpu.memory_space<vmem>>, vector<8x256xf32>
    %cst = arith.constant dense<0.000000e+00> : vector<8x8xf32>
    %6 = tpu.matmul %4, %5, %cst {dimension_numbers = #tpu.dot_dimension_numbers<[1], [1], [0], [0], [0, 0, 1, 0], [], []>} : vector<8x256xf32>, vector<8x256xf32>, vector<8x8xf32> -> vector<8x8xf32>
    %7 = arith.addf %3, %6 : vector<8x8xf32>
    %c0_6 = arith.constant 0 : index
    %c0_7 = arith.constant 0 : index
    %8 = vector.load %arg3[%c0_6, %c0_7] : memref<8x8xf32, #tpu.memory_space<vmem>>, vector<8x8xf32>
    tpu.vector_store %arg3[%c0_6, %c0_7], %7 {strides = array<i32>} : memref<8x8xf32, #tpu.memory_space<vmem>>, vector<8x8xf32>,
    %c0_i32_8 = arith.constant 0 : i32
    %9 = arith.cmpi eq, %arg1, %c0_i32_8 : i32
    %10 = arith.extui %9 : i1 to i32
    %c0_i32_9 = arith.constant 0 : i32
    %11 = arith.cmpi ne, %10, %c0_i32_9 : i32
    scf.if %11 {
      %c0_10 = arith.constant 0 : index
      %c0_11 = arith.constant 0 : index
      %12 = vector.load %arg3[%c0_10, %c0_11] : memref<8x8xf32, #tpu.memory_space<vmem>>, vector<8x8xf32>
      %cst_12 = arith.constant 4.8828125E-4 : f32
      %13 = vector.broadcast %cst_12 : f32 to vector<8x8xf32>
      %14 = arith.mulf %12, %13 : vector<8x8xf32>
      %c0_13 = arith.constant 0 : index
      %c0_14 = arith.constant 0 : index
      %15 = vector.load %arg3[%c0_13, %c0_14] : memref<8x8xf32, #tpu.memory_space<vmem>>, vector<8x8xf32>
      tpu.vector_store %arg3[%c0_13, %c0_14], %14 {strides = array<i32>} : memref<8x8xf32, #tpu.memory_space<vmem>>, vector<8x8xf32>,
    } else {
    }
    return
  }
  func.func @transform_0(%arg0: i32, %arg1: i32) -> (i32, i32) {
    %c0_i32 = arith.constant 0 : i32
    return %arg0, %arg1 : i32, i32
  }
  func.func @transform_1(%arg0: i32, %arg1: i32) -> (i32, i32) {
    %c0_i32 = arith.constant 0 : i32
    %c0_i32_0 = arith.constant 0 : i32
    return %arg0, %c0_i32 : i32, i32
  }
}

</mosaic_0001>

<bundles_post_ra>
// kernel: tpu_custom_call.1
= control target key start
LH: loop header
LB: loop body
LE: loop exit
PB: predicated region body
PF: predicated region fallthrough
CT: control target
= control target key end

     0   :  { %6 = vsyncpa [#allocation3], 0  ;;  %s175_s0 = inlined_call_operand.hbm [shape: f32[8,256], index: 0, kind: input, shape index: {}]   ;;  %s176_s1 = inlined_call_operand.hbm [shape: f32[8,8], index: 1, kind: output, shape index: {}]  }
   0x1   :  { %7 = vsyncpa [#allocation4], 0  ;;  %s13_s8 = sshll.u32 %s175_s0, 4  ;;  %s153_s9 = smov [#allocation2]   ;;  %s14_s8 = int_to_ptr.hbm [resolvable:$true] %s13_s8 }
   0x2   :  { %s15_s10 = sshll.u32 %s153_s9, 4  ;;  %s16_s10 = int_to_ptr.vmem [resolvable:$true] %s15_s10 }
   0x3   :  { %18 = dma.hbm_to_vmem [thread:$0]  %s14_s8, 256, %s16_s10, [#allocation3]  }
   0x4   :  { %149 = dma.done.wait [#allocation3], 256  }
   0x5   :  { %150 = vsyncadd [#allocation3], 4294967040  ;;  %v30_v0 = vld [vmem:[#allocation2] sm:$0xff]  ;;  %v31_v1 = vld [vmem:[#allocation2 + $0x8] sm:$0xff]  ;;  %vm27_vm0 = vcmask 64512   ;;  %v154_v2 = vmov 0.0  }
   0x6   :  { %47 = vmatpush.xpose.msra.mxu0 %v30_v0  ;;  %67 = vmatpush.xpose.msra.mxu1 %v31_v1  ;;  %28 = vst.msk [vmem:[#allocation5] sm:$0xff] %vm27_vm0, %v154_v2  ;;  %s155_s0 = smov [#allocation5]   ;;  %s88_s14 = sshll.u32 %s176_s1, 4  ;;  %s89_s14 = int_to_ptr.hbm [resolvable:$true] %s88_s14 }
   0x7   :  { %s86_s11 = sshll.u32 %s155_s0, 4  ;;  %s87_s11 = int_to_ptr.vmem [resolvable:$true] %s86_s11 }
   0x9   :  { %48 = vmatmul.f32.vlgmr.msra.gmra.mxu0 %v30_v0  ;;  %68 = vmatmul.f32.vlgmr.msra.gmra.mxu1 %v31_v1 }
   0xd   :  { %v29_v4 = vld [vmem:[#allocation5] sm:$0xff] }
  0x86   :  { %v49_v3 = vpop.f32.mrf.mxu0  ;;  %v69_v5 = vpop.f32.mrf.mxu1 }
  0x87   :  { %v70_v6 = vadd.f32 %v69_v5, %v49_v3 }
  0x89   :  { %v72_v7 = vadd.f32 %v70_v6, %v29_v4 }
  0x8b   :  { %74 = vst.msk [vmem:[#allocation5] sm:$0xff] %vm27_vm0, %v72_v7 }
  0x92   :  { %v78_v8 = vld [vmem:[#allocation5] sm:$0xff] }
  0x93   :  { %v79_v9 = vmul.f32 0.00048828125, %v78_v8 }
  0x95   :  { %80 = vst.msk [vmem:[#allocation5] sm:$0xff] %vm27_vm0, %v79_v9 }
  0x96   :  { %91 = dma.vmem_to_hbm [thread:$0]  %s87_s11, 128, %s89_s14, [#allocation4]  }
  0x97   :  { %151 = dma.done.wait [#allocation4], 128  }
  0x98   :  { %152 = vsyncadd [#allocation4], 4294967168 }
  0x99   :  { %96 = vsyncpa [#allocation3], 1 }
  0x9a   :  { %97 = vsyncpa [#allocation4], 1 }

</bundles_post_ra>
